<compile_context>
chip_gen: v5e
topology: v5e:2x2
jax: 0.10.0
libtpu: 0.0.40
codegen_flags: <defaults>
</compile_context>

<pallas_src>
import jax
import jax.numpy as jnp
from jax.experimental import pallas as pl
from jax.experimental.pallas import tpu as pltpu


def ffm_fuse_kernel(x1_ref, x2_ref, w1_ref, w2_ref, scale_ref, bias_ref, o_ref):
    # x1_ref: (1, C1, TP) bf16      x2_ref: (1, C2, TP) bf16
    # w1_ref: (1, Cout, C1) bf16    w2_ref: (1, Cout, C2) bf16   (se folded in)
    # scale_ref / bias_ref: (1, Cout, 1) f32  (BN and (1+atten) folded in)
    # o_ref: (1, Cout, TP) f32
    acc = jnp.dot(w1_ref[0], x1_ref[0], preferred_element_type=jnp.float32)
    acc = acc + jnp.dot(w2_ref[0], x2_ref[0], preferred_element_type=jnp.float32)
    o_ref[0] = (acc * scale_ref[0] + bias_ref[0]).astype(o_ref.dtype)


def _pick_pixel_tile(hw):
    # Largest lane-aligned tile (multiple of 128) that divides H*W, else full extent.
    for t in (2048, 1024, 512, 256, 128):
        if hw % t == 0:
            return t
    return hw


def feature_fusion_forward(fsp, fcp, convblk_w, bn_gamma, bn_beta, bn_mean,
                           bn_var, conv1_w, conv2_w, eps=1e-5):
    """FeatureFusionModule forward.  Inputs/outputs use PyTorch NCHW layout."""
    N, C1, H, W = fsp.shape
    C2 = fcp.shape[1]
    Cin = C1 + C2
    Cout = convblk_w.shape[0]
    Cmid = conv1_w.shape[0]
    HW = H * W
    f32 = jnp.float32

    x1 = fsp.reshape(N, C1, HW)
    x2 = fcp.reshape(N, C2, HW)

    # ---- tiny per-(N, C) global math, hoisted to the wrapper in f32 ----------
    mean1 = jnp.mean(x1.astype(f32), axis=2)                       # (N, C1)
    mean2 = jnp.mean(x2.astype(f32), axis=2)                       # (N, C2)
    mean_cat = jnp.concatenate([mean1, mean2], axis=1)             # (N, Cin)
    se = jax.nn.sigmoid(mean_cat)                                  # (N, Cin)

    wc = convblk_w.reshape(Cout, Cin).astype(f32)                  # (Cout, Cin)
    inv_std = 1.0 / jnp.sqrt(bn_var.astype(f32) + eps)
    bn_scale = bn_gamma.astype(f32) * inv_std                      # (Cout,)
    bn_bias = bn_beta.astype(f32) - bn_mean.astype(f32) * bn_scale # (Cout,)

    # mean over H,W of feat, computed analytically (1x1 conv + BN are affine).
    mean_feat = (mean_cat * se) @ wc.T * bn_scale + bn_bias        # (N, Cout)

    w1a = conv1_w.reshape(Cmid, Cout).astype(f32)
    w2a = conv2_w.reshape(Cout, Cmid).astype(f32)
    atten = jax.nn.sigmoid(jax.nn.relu(mean_feat @ w1a.T) @ w2a.T) # (N, Cout)

    # Fold se into per-batch conv weight; fold BN and (1+atten) (the residual
    # feat*atten + feat) into one per-batch affine.
    w_se = wc[None, :, :] * se[:, None, :]                         # (N, Cout, Cin)
    one_plus_att = 1.0 + atten
    eff_scale = (bn_scale[None, :] * one_plus_att).reshape(N, Cout, 1)
    eff_bias = (bn_bias[None, :] * one_plus_att).reshape(N, Cout, 1)

    # bf16 matmul operands (f32 accumulation inside the kernel).
    x1b = x1.astype(jnp.bfloat16)
    x2b = x2.astype(jnp.bfloat16)
    w1b = w_se[:, :, :C1].astype(jnp.bfloat16)
    w2b = w_se[:, :, C1:].astype(jnp.bfloat16)

    TP = _pick_pixel_tile(HW)
    grid = (N, HW // TP)

    # Explicit VMEM budget (double-buffered blocks + slack), clamped so the
    # limit is valid on v5e (128 MiB), v6e (128 MiB) and v7x (64 MiB per TC).
    blk_bytes = (C1 * TP * 2 + C2 * TP * 2            # x1 / x2 tiles (bf16)
                 + Cout * C1 * 2 + Cout * C2 * 2      # folded weights (bf16)
                 + 2 * Cout * 4                       # eff scale / bias (f32)
                 + Cout * TP * 4)                     # output tile (f32)
    vmem_limit = int(min(max(4 * blk_bytes + (2 << 20), 16 << 20), 48 << 20))

    out = pl.pallas_call(
        ffm_fuse_kernel,
        out_shape=jax.ShapeDtypeStruct((N, Cout, HW), jnp.float32),
        grid_spec=pltpu.PrefetchScalarGridSpec(
            num_scalar_prefetch=0,
            grid=grid,
            in_specs=[
                pl.BlockSpec((1, C1, TP), lambda n, s: (n, 0, s)),
                pl.BlockSpec((1, C2, TP), lambda n, s: (n, 0, s)),
                pl.BlockSpec((1, Cout, C1), lambda n, s: (n, 0, 0)),
                pl.BlockSpec((1, Cout, C2), lambda n, s: (n, 0, 0)),
                pl.BlockSpec((1, Cout, 1), lambda n, s: (n, 0, 0)),
                pl.BlockSpec((1, Cout, 1), lambda n, s: (n, 0, 0)),
            ],
            out_specs=pl.BlockSpec((1, Cout, TP), lambda n, s: (n, 0, s)),
        ),
        compiler_params=pltpu.CompilerParams(
            dimension_semantics=("parallel", "parallel"),
            vmem_limit_bytes=vmem_limit),
    )(x1b, x2b, w1b, w2b, eff_scale, eff_bias)

    return out.reshape(N, Cout, H, W)


def ffm_reference(fsp, fcp, convblk_w, gamma, beta, rmean, rvar, conv1_w,
                  conv2_w, eps=1e-5):
    """Pure-JAX f32 reference of the PyTorch forward (eval-mode BN)."""
    dn = ("NCHW", "OIHW", "NCHW")
    fcat = jnp.concatenate([fsp, fcp], axis=1)
    se = jax.nn.sigmoid(jnp.mean(fcat, axis=(2, 3), keepdims=True))
    x = fcat * se
    feat = jax.lax.conv_general_dilated(x, convblk_w, (1, 1), "VALID",
                                        dimension_numbers=dn)
    inv = 1.0 / jnp.sqrt(rvar + eps)
    feat = (feat * (gamma * inv)[None, :, None, None]
            + (beta - rmean * gamma * inv)[None, :, None, None])
    att = jnp.mean(feat, axis=(2, 3), keepdims=True)
    att = jax.lax.conv_general_dilated(att, conv1_w, (1, 1), "VALID",
                                       dimension_numbers=dn)
    att = jax.nn.relu(att)
    att = jax.lax.conv_general_dilated(att, conv2_w, (1, 1), "VALID",
                                       dimension_numbers=dn)
    att = jax.nn.sigmoid(att)
    return feat * att + feat


if __name__ == "__main__":
    key = jax.random.PRNGKey(0)
    ks = jax.random.split(key, 9)

    N, C1, C2, H, W = 2, 2, 2, 16, 16
    Cin = C1 + C2           # FFM in_chan (after concat)
    Cout = 8                # FFM out_chan
    Cmid = Cout // 4

    fsp = jax.random.normal(ks[0], (N, C1, H, W), jnp.float32)
    fcp = jax.random.normal(ks[1], (N, C2, H, W), jnp.float32)

    # kaiming_normal_(a=1): std = 1/sqrt(fan_in)
    wc = jax.random.normal(ks[2], (Cout, Cin, 1, 1), jnp.float32) / jnp.sqrt(float(Cin))
    w1 = jax.random.normal(ks[3], (Cmid, Cout, 1, 1), jnp.float32) / jnp.sqrt(float(Cout))
    w2 = jax.random.normal(ks[4], (Cout, Cmid, 1, 1), jnp.float32) / jnp.sqrt(float(Cmid))

    gamma = 1.0 + 0.1 * jax.random.normal(ks[5], (Cout,), jnp.float32)
    beta = 0.1 * jax.random.normal(ks[6], (Cout,), jnp.float32)
    rmean = 0.1 * jax.random.normal(ks[7], (Cout,), jnp.float32)
    rvar = jnp.abs(jax.random.normal(ks[8], (Cout,), jnp.float32)) + 0.5

    out = feature_fusion_forward(fsp, fcp, wc, gamma, beta, rmean, rvar, w1, w2)
    jax.block_until_ready(out)
    assert out.shape == (N, Cout, H, W)

    ref = ffm_reference(fsp, fcp, wc, gamma, beta, rmean, rvar, w1, w2)
    rel_err = float(jnp.linalg.norm(out - ref) / (jnp.linalg.norm(ref) + 1e-12))
    assert rel_err < 2e-2, f"relative error too large: {rel_err}"

    print("KERNEL_OK")
</pallas_src>

<mosaic_0001>
module attributes {stable_mosaic.version = 11 : i64} {
  func.func @ffm_fuse_kernel(%arg0: i32, %arg1: i32, %arg2: memref<1x2x256xbf16, #tpu.memory_space<vmem>>, %arg3: memref<1x2x256xbf16, #tpu.memory_space<vmem>>, %arg4: memref<1x8x2xbf16, #tpu.memory_space<vmem>>, %arg5: memref<1x8x2xbf16, #tpu.memory_space<vmem>>, %arg6: memref<1x8x1xf32, #tpu.memory_space<vmem>>, %arg7: memref<1x8x1xf32, #tpu.memory_space<vmem>>, %arg8: memref<1x8x256xf32, #tpu.memory_space<vmem>>) attributes {dimension_semantics = [#tpu.dimension_semantics<parallel>, #tpu.dimension_semantics<parallel>], iteration_bounds = array<i64: 2, 1>, scalar_prefetch = 0 : i64, scratch_operands = 0 : i64, tpu.core_type = #tpu.core_type<tc>, window_params = [{transform_indices = @transform_0, window_bounds = array<i64: 1, 2, 256>}, {transform_indices = @transform_1, window_bounds = array<i64: 1, 2, 256>}, {transform_indices = @transform_2, window_bounds = array<i64: 1, 8, 2>}, {transform_indices = @transform_3, window_bounds = array<i64: 1, 8, 2>}, {transform_indices = @transform_4, window_bounds = array<i64: 1, 8, 1>}, {transform_indices = @transform_5, window_bounds = array<i64: 1, 8, 1>}, {transform_indices = @transform_6, window_bounds = array<i64: 1, 8, 256>}]} {
    %c0 = arith.constant 0 : index
    %c0_0 = arith.constant 0 : index
    %c0_1 = arith.constant 0 : index
    %0 = vector.load %arg4[%c0, %c0_0, %c0_1] : memref<1x8x2xbf16, #tpu.memory_space<vmem>>, vector<1x8x2xbf16>
    %1 = vector.shape_cast %0 : vector<1x8x2xbf16> to vector<8x2xbf16>
    %c0_2 = arith.constant 0 : index
    %c0_3 = arith.constant 0 : index
    %c0_4 = arith.constant 0 : index
    %2 = vector.load %arg2[%c0_2, %c0_3, %c0_4] : memref<1x2x256xbf16, #tpu.memory_space<vmem>>, vector<1x2x256xbf16>
    %3 = vector.shape_cast %2 : vector<1x2x256xbf16> to vector<2x256xbf16>
    %cst = arith.constant dense<0.000000e+00> : vector<8x256xf32>
    %4 = tpu.matmul %1, %3, %cst {dimension_numbers = #tpu.dot_dimension_numbers<[1], [0], [0], [1], [0, 0, 1, 1], [], []>} : vector<8x2xbf16>, vector<2x256xbf16>, vector<8x256xf32> -> vector<8x256xf32>
    %c0_5 = arith.constant 0 : index
    %c0_6 = arith.constant 0 : index
    %c0_7 = arith.constant 0 : index
    %5 = vector.load %arg5[%c0_5, %c0_6, %c0_7] : memref<1x8x2xbf16, #tpu.memory_space<vmem>>, vector<1x8x2xbf16>
    %6 = vector.shape_cast %5 : vector<1x8x2xbf16> to vector<8x2xbf16>
    %c0_8 = arith.constant 0 : index
    %c0_9 = arith.constant 0 : index
    %c0_10 = arith.constant 0 : index
    %7 = vector.load %arg3[%c0_8, %c0_9, %c0_10] : memref<1x2x256xbf16, #tpu.memory_space<vmem>>, vector<1x2x256xbf16>
    %8 = vector.shape_cast %7 : vector<1x2x256xbf16> to vector<2x256xbf16>
    %cst_11 = arith.constant dense<0.000000e+00> : vector<8x256xf32>
    %9 = tpu.matmul %6, %8, %cst_11 {dimension_numbers = #tpu.dot_dimension_numbers<[1], [0], [0], [1], [0, 0, 1, 1], [], []>} : vector<8x2xbf16>, vector<2x256xbf16>, vector<8x256xf32> -> vector<8x256xf32>
    %10 = arith.addf %4, %9 : vector<8x256xf32>
    %c0_12 = arith.constant 0 : index
    %c0_13 = arith.constant 0 : index
    %c0_14 = arith.constant 0 : index
    %11 = vector.load %arg6[%c0_12, %c0_13, %c0_14] : memref<1x8x1xf32, #tpu.memory_space<vmem>>, vector<1x8x1xf32>
    %12 = vector.shape_cast %11 : vector<1x8x1xf32> to vector<8x1xf32>
    %13 = vector.broadcast %12 : vector<8x1xf32> to vector<8x256xf32>
    %14 = arith.mulf %10, %13 : vector<8x256xf32>
    %c0_15 = arith.constant 0 : index
    %c0_16 = arith.constant 0 : index
    %c0_17 = arith.constant 0 : index
    %15 = vector.load %arg7[%c0_15, %c0_16, %c0_17] : memref<1x8x1xf32, #tpu.memory_space<vmem>>, vector<1x8x1xf32>
    %16 = vector.shape_cast %15 : vector<1x8x1xf32> to vector<8x1xf32>
    %17 = vector.broadcast %16 : vector<8x1xf32> to vector<8x256xf32>
    %18 = arith.addf %14, %17 : vector<8x256xf32>
    %c0_18 = arith.constant 0 : index
    %c0_19 = arith.constant 0 : index
    %c0_20 = arith.constant 0 : index
    %19 = vector.load %arg8[%c0_18, %c0_19, %c0_20] : memref<1x8x256xf32, #tpu.memory_space<vmem>>, vector<1x8x256xf32>
    %20 = vector.shape_cast %19 : vector<1x8x256xf32> to vector<8x256xf32>
    %21 = vector.shape_cast %18 : vector<8x256xf32> to vector<1x8x256xf32>
    tpu.vector_store %arg8[%c0_18, %c0_19, %c0_20], %21 {strides = array<i32>} : memref<1x8x256xf32, #tpu.memory_space<vmem>>, vector<1x8x256xf32>,
    return
  }
  func.func @transform_0(%arg0: i32, %arg1: i32) -> (i32, i32, i32) {
    %c0_i32 = arith.constant 0 : i32
    %c0_i32_0 = arith.constant 0 : i32
    return %arg0, %c0_i32, %arg1 : i32, i32, i32
  }
  func.func @transform_1(%arg0: i32, %arg1: i32) -> (i32, i32, i32) {
    %c0_i32 = arith.constant 0 : i32
    %c0_i32_0 = arith.constant 0 : i32
    return %arg0, %c0_i32, %arg1 : i32, i32, i32
  }
  func.func @transform_2(%arg0: i32, %arg1: i32) -> (i32, i32, i32) {
    %c0_i32 = arith.constant 0 : i32
    %c0_i32_0 = arith.constant 0 : i32
    %c0_i32_1 = arith.constant 0 : i32
    return %arg0, %c0_i32, %c0_i32_0 : i32, i32, i32
  }
  func.func @transform_3(%arg0: i32, %arg1: i32) -> (i32, i32, i32) {
    %c0_i32 = arith.constant 0 : i32
    %c0_i32_0 = arith.constant 0 : i32
    %c0_i32_1 = arith.constant 0 : i32
    return %arg0, %c0_i32, %c0_i32_0 : i32, i32, i32
  }
  func.func @transform_4(%arg0: i32, %arg1: i32) -> (i32, i32, i32) {
    %c0_i32 = arith.constant 0 : i32
    %c0_i32_0 = arith.constant 0 : i32
    %c0_i32_1 = arith.constant 0 : i32
    return %arg0, %c0_i32, %c0_i32_0 : i32, i32, i32
  }
  func.func @transform_5(%arg0: i32, %arg1: i32) -> (i32, i32, i32) {
    %c0_i32 = arith.constant 0 : i32
    %c0_i32_0 = arith.constant 0 : i32
    %c0_i32_1 = arith.constant 0 : i32
    return %arg0, %c0_i32, %c0_i32_0 : i32, i32, i32
  }
  func.func @transform_6(%arg0: i32, %arg1: i32) -> (i32, i32, i32) {
    %c0_i32 = arith.constant 0 : i32
    %c0_i32_0 = arith.constant 0 : i32
    return %arg0, %c0_i32, %arg1 : i32, i32, i32
  }
}

</mosaic_0001>

<bundles_post_ra>
// kernel: tpu_custom_call.1
= control target key start
LH: loop header
LB: loop body
LE: loop exit
PB: predicated region body
PF: predicated region fallthrough
CT: control target
= control target key end

     0   :  { %11 = vsyncpa [#allocation3], 0  ;;  %s949_s0 = inlined_call_operand.vmem [shape: bf16[2,2,256], index: 0, kind: input, shape index: {}]   ;;  %s950_s1 = inlined_call_operand.vmem [shape: bf16[2,2,256], index: 1, kind: input, shape index: {}]   ;;  %s951_s2 = inlined_call_operand.vmem [shape: bf16[2,8,2], index: 2, kind: input, shape index: {}]   ;;  %s952_s3 = inlined_call_operand.vmem [shape: bf16[2,8,2], index: 3, kind: input, shape index: {}]   ;;  %s953_s4 = inlined_call_operand.vmem [shape: f32[2,8,1], index: 4, kind: input, shape index: {}]   ;;  %s954_s5 = inlined_call_operand.vmem [shape: f32[2,8,1], index: 5, kind: input, shape index: {}]   ;;  %s955_s6 = inlined_call_operand.hbm [shape: f32[2,8,256], index: 6, kind: output, shape index: {}]  }
   0x1   :  { %13 = vsyncpa [#allocation3 + $0x1], 0  ;;  %s828_s21 = smov 0   ;;  %s830_s22 = smov 0  }
   0x2   :  { %s832_s23 = smov 0   ;;  %s834_s24 = smov 0  }
   0x3   :  { %s836_s25 = smov 0   ;;  %s838_s26 = smov 0  }
   0x4 LB: > { %s633_s27 = sadd.s32 4294967295, %s790_s26   ;;  %s634_s28 = sadd.s32 4294967294, %s790_s26   ;;  %s790_s26 = sphi %s838_s26, %s19_s26   ;;  %s786_s25 = sphi %s836_s25, %s965_s25   ;;  %s782_s24 = sphi %s834_s24, %s964_s24   ;;  %s778_s23 = sphi %s832_s23, %s963_s23   ;;  %s774_s22 = sphi %s830_s22, %s962_s22   ;;  %s770_s21 = sphi %s828_s21, %s961_s21  }
   0x5   : > { %s31_s29 = sadd.s32 1, %s786_s25  ;;  %s200_s30 = sadd.s32 1, %s778_s23 }
   0x6   : > { %p33_p0 = scmp.ge.s32.totalorder %s31_s29, 2  ;;  %p210_p1 = scmp.ne.s32.totalorder %s778_s23, %s774_s22 }
   0x7   : > { %p211_p2 = scmp.eq.s32.totalorder %s633_s27, 1  ;;  %p216_p3 = scmp.ne.s32.totalorder %s774_s22, %s770_s21 }
   0x8   : > { %s967_s29 = smov (%p33_p0, %s31_s29), 0  ;;  %p217_p5 = scmp.eq.s32.totalorder %s634_s28, 1 }
   0x9   : > { %957 = sst [smem:[#allocation5_spill]] %s967_s29  ;;  %p868_p4 = por %p211_p2, %p210_p1 }
   0xa   : > { %s195_s8 = ssub.s32 %s786_s25, %s967_s29  ;;  %p637_p6 = scmp.ge.s32.totalorder %s790_s26, 1 }
   0xb   : > { %p198_p7 = scmp.eq.s32.totalorder %s195_s8, 0  ;;  %p875_p8 = por %p217_p5, %p216_p3 }
   0xc   : > { %p287_p9 = scmp.lt.s32.totalorder %s790_s26, 3 }
   0xd   : > { %s881_s10 = scalar_select %p198_p7, %s778_s23, %s200_s30  }
   0xe   : > { %p288_p10 = pnand %p637_p6, %p287_p9 }
   0xf   : > { %p345_p11 = scmp.lt.s32.totalorder (!%p288_p10), %s782_s24, 1 }
  0x10   : > { %291 = sbr.rel (%p288_p10) target bundleno = 188 (0xbc), region = 44 }
  0x15   : > { %v792_v0 = vmov 0   ;;  %s885_s11 = scalar_select %p345_p11, %s782_s24, 1  ;;  %vm392_vm0 = vcmask 1040384   ;;  %vm388_vm1 = vcmask 15360  }
  0x16   : > { %711 = vset.pattern.permute.xlu0 %v792_v0 }
  0x17   : > { %s639_s12 = sshll.u32 %s885_s11, 1  ;;  %s643_s16 = sshll.u32 %s885_s11, 3 }
  0x18   : > { %s360_s15 = scalar_lea.vmem %s950_s1, %s639_s12  ;;  %s351_s19 = scalar_lea.vmem %s949_s0, %s639_s12 }
  0x19   : > { %v383_v1 = vld [vmem:[%s360_s15] sm:$0x3]  ;;  %s373_s28 = scalar_lea.vmem %s953_s4, %s643_s16  ;;  %s641_s30 = sshll.u32 %s885_s11, 2 }
  0x1a   : > { %385 = vst [vmem:[#allocation1] ss:$9 sm:$0xff] %v383_v1  ;;  %v460_v2 = vld [vmem:[%s373_s28] sm:$0xff]  ;;  %s369_s13 = scalar_lea.vmem %s952_s3, %s641_s30  ;;  %s377_s17 = scalar_lea.vmem %s954_s5, %s643_s16 }
  0x1b   : > { %463 = vperm.xlu0 %711, %v460_v2   ;;  %v381_v3 = vld [vmem:[%s351_s19] sm:$0x3]  ;;  %s365_s12 = scalar_lea.vmem %s951_s2, %s641_s30  ;;  %s341_s16 = sand.u32 1, %s774_s22  }
  0x1c   : > { %v382_v8 = vld [vmem:[%s369_s13] sm:$0xf]  ;;  %s638_s18 = sshll.u32 %s341_s16, 4  ;;  %s654_s19 = sshll.u32 %s782_s24, 4 }
  0x1d   : > { %v468_v9 = vld [vmem:[%s377_s17] sm:$0xff]  ;;  %s492_s28 = scalar_lea.hbm %s955_s6, %s654_s19  ;;  %s343_s30 = scalar_lea.vmem [#allocation2], %s638_s18 }
  0x1e   : > { %v380_v14 = vld [vmem:[%s365_s12] sm:$0xf]  ;;  %s494_s8 = sshll.u32 %s343_s30, 4  ;;  %s496_s13 = sshll.u32 %s492_s28, 4  ;;  %s495_s8 = int_to_ptr.vmem [resolvable:$true] %s494_s8  ;;  %s497_s13 = int_to_ptr.hbm [resolvable:$true] %s496_s13 }
  0x1f   : > { %s479_s24 = scalar_lea.sflag [#allocation3], %s341_s16  ;;  %s726_s14 = sshra.s32 %s497_s13, 4  ;;  %s727_s14 = int_to_ptr.hbm [resolvable:$true] %s726_s14 }
  0x20   : > { %s728_s15 = scalar_lea.hbm %s727_s14, 16  ;;  %s732_s11 = scalar_lea.hbm %s955_s6, 32 }
  0x21   : > { %v386_v4 = vld [vmem:[#allocation1] sm:$0xff]  ;;  %v387_v5 = vld [vmem:[#allocation1 + $0x9] sm:$0xff]  ;;  %p729_p12 = scmp.ne.s32.totalorder %s727_s14, %s728_s15  ;;  %p733_p1 = scmp.lt.s32.totalorder %s727_s14, %s955_s6 }
  0x22   : > { %v393_v6 = vsel %vm392_vm0, %v386_v4, 0  ;;  %v395_v7 = vsel %vm392_vm0, %v387_v5, 0  ;;  %424 = vst [vmem:[#allocation1] ss:$9 sm:$0xff] %v381_v3  ;;  %p734_p2 = scmp.lt.s32.totalorder %s732_s11, %s728_s15 }
  0x23   : > { %404 = vmatpush.bf16.msra.mxu0 %v393_v6  ;;  %417 = vmatpush.bf16.msra.mxu1 %v395_v7  ;;  %p730_p13 = pnand %p729_p12, %p868_p4 }
  0x24   : > { %471 = vperm.xlu0 %711, %v468_v9   ;;  %p735_p3 = por %p734_p2, %p733_p1 }
  0x25   : > { %p731_p0 = pneg %p730_p13 }
  0x26   : > { %645 = vmatmul.msk.bf16.vlgmr.msra.gmra.mxu0 %vm388_vm1, %v382_v8  ;;  %646 = vmatmul.msk.bf16.vlgmr.msra.gmra.mxu1 %vm388_vm1, %v382_v8 }
  0x27   : > { %p736_p5 = pnand %p735_p3, %p731_p0 }
  0x29   : > { %v425_v10 = vld [vmem:[#allocation1] sm:$0xff]  ;;  %v426_v11 = vld [vmem:[#allocation1 + $0x9] sm:$0xff] }
  0x2a   : > { %v430_v12 = vsel %vm392_vm0, %v425_v10, 0  ;;  %v432_v13 = vsel %vm392_vm0, %v426_v11, 0 }
  0x2b   : > { %441 = vmatpush.bf16.msra.mxu2 %v430_v12  ;;  %454 = vmatpush.bf16.msra.mxu3 %v432_v13 }
  0x2e   : > { %647 = vmatmul.msk.bf16.vlgmr.msra.gmra.mxu2 %vm388_vm1, %v380_v14  ;;  %648 = vmatmul.msk.bf16.vlgmr.msra.gmra.mxu3 %vm388_vm1, %v380_v14 }
  0x8d   : > { %v464_v17 = vpop.permute.xlu0 %463 }
  0x96   : > { %v472_v26 = vpop.permute.xlu0 %471 }
  0xa3   : > { %v406_v15 = vpop.f32.mrf.mxu0  ;;  %v419_v16 = vpop.f32.mrf.mxu1 }
  0xab   : > { %v408_v18 = vpop.f32.mrf.mxu0  ;;  %v421_v19 = vpop.f32.mrf.mxu1 }
  0xb1   : > { %v443_v20 = vpop.f32.mrf.mxu2  ;;  %v456_v21 = vpop.f32.mrf.mxu3 }
  0xb2   : > { %v444_v22 = vadd.f32 %v443_v20, %v406_v15  ;;  %v457_v23 = vadd.f32 %v456_v21, %v419_v16 }
  0xb4   : > { %v466_v24 = vmul.f32 %v464_v17, %v444_v22  ;;  %v467_v25 = vmul.f32 %v464_v17, %v457_v23 }
  0xb6   : > { %v474_v27 = vadd.f32 %v472_v26, %v466_v24  ;;  %v475_v28 = vadd.f32 %v472_v26, %v467_v25 }
  0xb8   : > { %476 = vst [vmem:[%s343_s30] sm:$0xff] %v474_v27 }
  0xb9   : > { %v445_v29 = vpop.f32.mrf.mxu2  ;;  %v458_v30 = vpop.f32.mrf.mxu3  ;;  %477 = vst [vmem:[%s343_s30 + $0x8] sm:$0xff] %v475_v28 }
  0xba   : > { %739 = shalt.err (!%p736_p5)
}
  0xbb   : > { %655 = dma.vmem_to_hbm [thread:$0]  (%p868_p4), %s495_s8, 256, %s497_s13, %s479_s24  }
  0xbc PF: > { %p661_p6 = scmp.ge.s32.totalorder %s790_s26, 2  ;;  %s508_s16 = sand.u32 1, %s770_s21  }
  0xbd   : > { %s509_s19 = scalar_lea.sflag [#allocation3], %s508_s16 }
  0xbe   : > { %p658_p7 = pnand %p661_p6, %p875_p8 }
  0xc0   : > { %p659_p9 = pneg %p658_p7 }
  0xc2   : > { %765 = dma.done.wait (%p659_p9), %s509_s19, 256  }
  0xc3   : > { %767 = vsyncadd (%p659_p9), %s509_s19, 4294967040  ;;  %s19_s26 = sadd.s32 1, %s790_s26   ;;  %s960_s7 = sld [smem:[#allocation5_spill]] }
  0xc4   : > { %p16_p10 = scmp.ge.s32.totalorder %s19_s26, 4   ;;  %s961_s21 = smov %s774_s22 }
  0xc5   : > { %s962_s22 = smov %s778_s23  ;;  %s963_s23 = smov %s881_s10 }
  0xc6   : > { %s964_s24 = smov %s786_s25  ;;  %18 = sbr.rel (!%p16_p10) target bundleno = 4 (0x4), region = 94 }
  0xc9   : > { %s965_s25 = smov %s960_s7 }
  0xcb   :  { %515 = vsyncpa [#allocation3], 1 }
  0xcc   :  { %517 = vsyncpa [#allocation3 + $0x1], 1 }

</bundles_post_ra>
